<compile_context>
chip_gen: v7x
topology: tpu7x:2x2x1
jax: 0.10.0
libtpu: 0.0.40
codegen_flags: <defaults>
</compile_context>

<pallas_src>
import functools

import jax
import jax.numpy as jnp
from jax import lax
from jax.experimental import pallas as pl
from jax.experimental.pallas import tpu as pltpu

LANES = 128
SUBLANES = 8


def _f1_partials_kernel(pred_ref, targ_ref, psum_ref, pcnt_ref, *,
                        block_rows, n, needs_tail_mask):
    """One grid step: fold a (block_rows, 128) tile into (8, 128) partials."""
    o = pred_ref[...].astype(jnp.float32)
    t = targ_ref[...].astype(jnp.float32)

    valid = t != -1.0                       # ignore-label mask
    if needs_tail_mask:
        # Mask out block-padding / wrapper-padding past the true element count.
        i = pl.program_id(0)
        row = lax.broadcasted_iota(jnp.int32, (block_rows, LANES), 0)
        lane = lax.broadcasted_iota(jnp.int32, (block_rows, LANES), 1)
        gidx = (i * block_rows + row) * LANES + lane
        valid = valid & (gidx < n)

    diff = jnp.where(valid, jnp.abs(o - t), 0.0)   # losses[mask] *= 0
    ones = valid.astype(jnp.float32)

    # Fold (block_rows, 128) -> (8, 128): pure VPU adds across vregs; the full
    # cross-lane reduce happens only once, in the wrapper, on tiny partials.
    nf = block_rows // SUBLANES
    psum_ref[0] = diff.reshape(nf, SUBLANES, LANES).sum(axis=0)
    pcnt_ref[0] = ones.reshape(nf, SUBLANES, LANES).sum(axis=0)


def custom_f1_loss(output, target, *, row_tile=2048):
    """Pallas implementation of CustomF1Loss.forward(output, target)."""
    assert output.shape == target.shape

    n = int(output.size)
    rows = pl.cdiv(n, LANES)
    rows = pl.cdiv(rows, SUBLANES) * SUBLANES   # rows is a multiple of 8
    pad = rows * LANES - n

    pred_flat = output.reshape(-1)
    targ_flat = target.reshape(-1)
    if pad:
        # Rare ragged case only (numel % 128 != 0); the aligned case has zero
        # wrapper-side copies.  Pad target with -1 so padding is masked anyway.
        pred_flat = jnp.pad(pred_flat, (0, pad))
        targ_flat = jnp.pad(targ_flat, (0, pad),
                            constant_values=jnp.array(-1, target.dtype))
    pred2d = pred_flat.reshape(rows, LANES)
    targ2d = targ_flat.reshape(rows, LANES)

    row_tile = max(SUBLANES, (int(row_tile) // SUBLANES) * SUBLANES)
    block_rows = min(row_tile, rows)            # multiple of 8 by construction
    num_blocks = pl.cdiv(rows, block_rows)
    needs_tail_mask = (num_blocks * block_rows * LANES) != n

    kernel = functools.partial(
        _f1_partials_kernel,
        block_rows=block_rows, n=n, needs_tail_mask=needs_tail_mask)

    psum, pcnt = pl.pallas_call(
        kernel,
        out_shape=(
            jax.ShapeDtypeStruct((num_blocks, SUBLANES, LANES), jnp.float32),
            jax.ShapeDtypeStruct((num_blocks, SUBLANES, LANES), jnp.float32),
        ),
        grid_spec=pltpu.PrefetchScalarGridSpec(
            num_scalar_prefetch=0,
            grid=(num_blocks,),
            in_specs=[
                pl.BlockSpec((block_rows, LANES), lambda i: (i, 0)),
                pl.BlockSpec((block_rows, LANES), lambda i: (i, 0)),
            ],
            out_specs=(
                pl.BlockSpec((1, SUBLANES, LANES), lambda i: (i, 0, 0)),
                pl.BlockSpec((1, SUBLANES, LANES), lambda i: (i, 0, 0)),
            ),
        ),
        compiler_params=pltpu.CompilerParams(
            # Each step writes its own partial block -> fully parallel grid
            # (sharded across both TensorCores on v7x).
            dimension_semantics=("parallel",),
        ),
    )(pred2d, targ2d)

    # Final tiny combine + exact divide (keeps 1e-5 tolerance vs reference).
    return jnp.sum(psum) / (jnp.sum(pcnt) + 1e-6)


def _reference(output, target):
    mask = target == -1
    losses = jnp.abs(output - target)
    losses = jnp.where(mask, 0.0, losses)
    return jnp.sum(losses) / ((~mask).sum() + 1e-6)


if __name__ == "__main__":
    key = jax.random.PRNGKey(0)
    k1, k2, k3 = jax.random.split(key, 3)

    B, C, H, W = 2, 4, 16, 16
    output = jax.random.normal(k1, (B, C, H, W), dtype=jnp.float32)
    target = jax.random.normal(k2, (B, C, H, W), dtype=jnp.float32)
    # Sprinkle in some ignore-labels (-1) like the module expects.
    ignore = jax.random.bernoulli(k3, 0.25, (B, C, H, W))
    target = jnp.where(ignore, -1.0, target)

    loss = custom_f1_loss(output, target)
    jax.block_until_ready(loss)

    ref = _reference(output, target)
    assert jnp.allclose(loss, ref, rtol=1e-5, atol=1e-5), (loss, ref)

    print("KERNEL_OK")
</pallas_src>

<mosaic_0001>
module attributes {stable_mosaic.version = 11 : i64} {
  func.func @_f1_partials_kernel(%arg0: i32, %arg1: memref<16x128xf32, #tpu.memory_space<vmem>>, %arg2: memref<16x128xf32, #tpu.memory_space<vmem>>, %arg3: memref<1x8x128xf32, #tpu.memory_space<vmem>>, %arg4: memref<1x8x128xf32, #tpu.memory_space<vmem>>) attributes {dimension_semantics = [#tpu.dimension_semantics<parallel>], iteration_bounds = array<i64: 1>, scalar_prefetch = 0 : i64, scratch_operands = 0 : i64, tpu.core_type = #tpu.core_type<tc>, window_params = [{transform_indices = @transform_0, window_bounds = array<i64: 16, 128>}, {transform_indices = @transform_1, window_bounds = array<i64: 16, 128>}, {transform_indices = @transform_2, window_bounds = array<i64: 1, 8, 128>}, {transform_indices = @transform_3, window_bounds = array<i64: 1, 8, 128>}]} {
    %c0 = arith.constant 0 : index
    %c0_0 = arith.constant 0 : index
    %0 = vector.load %arg1[%c0, %c0_0] : memref<16x128xf32, #tpu.memory_space<vmem>>, vector<16x128xf32>
    %c0_1 = arith.constant 0 : index
    %c0_2 = arith.constant 0 : index
    %1 = vector.load %arg2[%c0_1, %c0_2] : memref<16x128xf32, #tpu.memory_space<vmem>>, vector<16x128xf32>
    %cst = arith.constant -1.000000e+00 : f32
    %2 = vector.broadcast %cst : f32 to vector<16x128xf32>
    %3 = arith.cmpf one, %1, %2 : vector<16x128xf32>
    %4 = arith.subf %0, %1 : vector<16x128xf32>
    %5 = math.absf %4 : vector<16x128xf32>
    %cst_3 = arith.constant 0.000000e+00 : f32
    %6 = vector.broadcast %cst_3 : f32 to vector<16x128xf32>
    %7 = arith.select %3, %5, %6 : vector<16x128xi1>, vector<16x128xf32>
    %8 = arith.extui %3 : vector<16x128xi1> to vector<16x128xi32>
    %9 = arith.sitofp %8 : vector<16x128xi32> to vector<16x128xf32>
    %10 = vector.shape_cast %7 : vector<16x128xf32> to vector<2x8x128xf32>
    %cst_4 = arith.constant dense<0.000000e+00> : vector<8x128xf32>
    %11 = vector.multi_reduction <add>, %10, %cst_4 [0] : vector<2x8x128xf32> to vector<8x128xf32>
    %c0_5 = arith.constant 0 : index
    %c0_6 = arith.constant 0 : index
    %c0_7 = arith.constant 0 : index
    %12 = vector.load %arg3[%c0_5, %c0_6, %c0_7] : memref<1x8x128xf32, #tpu.memory_space<vmem>>, vector<1x8x128xf32>
    %13 = vector.shape_cast %12 : vector<1x8x128xf32> to vector<8x128xf32>
    %14 = vector.shape_cast %11 : vector<8x128xf32> to vector<1x8x128xf32>
    tpu.vector_store %arg3[%c0_5, %c0_6, %c0_7], %14 {strides = array<i32>} : memref<1x8x128xf32, #tpu.memory_space<vmem>>, vector<1x8x128xf32>,
    %15 = vector.shape_cast %9 : vector<16x128xf32> to vector<2x8x128xf32>
    %cst_8 = arith.constant dense<0.000000e+00> : vector<8x128xf32>
    %16 = vector.multi_reduction <add>, %15, %cst_8 [0] : vector<2x8x128xf32> to vector<8x128xf32>
    %c0_9 = arith.constant 0 : index
    %c0_10 = arith.constant 0 : index
    %c0_11 = arith.constant 0 : index
    %17 = vector.load %arg4[%c0_9, %c0_10, %c0_11] : memref<1x8x128xf32, #tpu.memory_space<vmem>>, vector<1x8x128xf32>
    %18 = vector.shape_cast %17 : vector<1x8x128xf32> to vector<8x128xf32>
    %19 = vector.shape_cast %16 : vector<8x128xf32> to vector<1x8x128xf32>
    tpu.vector_store %arg4[%c0_9, %c0_10, %c0_11], %19 {strides = array<i32>} : memref<1x8x128xf32, #tpu.memory_space<vmem>>, vector<1x8x128xf32>,
    return
  }
  func.func @transform_0(%arg0: i32) -> (i32, i32) {
    %c0_i32 = arith.constant 0 : i32
    %c0_i32_0 = arith.constant 0 : i32
    return %arg0, %c0_i32 : i32, i32
  }
  func.func @transform_1(%arg0: i32) -> (i32, i32) {
    %c0_i32 = arith.constant 0 : i32
    %c0_i32_0 = arith.constant 0 : i32
    return %arg0, %c0_i32 : i32, i32
  }
  func.func @transform_2(%arg0: i32) -> (i32, i32, i32) {
    %c0_i32 = arith.constant 0 : i32
    %c0_i32_0 = arith.constant 0 : i32
    %c0_i32_1 = arith.constant 0 : i32
    return %arg0, %c0_i32, %c0_i32_0 : i32, i32, i32
  }
  func.func @transform_3(%arg0: i32) -> (i32, i32, i32) {
    %c0_i32 = arith.constant 0 : i32
    %c0_i32_0 = arith.constant 0 : i32
    %c0_i32_1 = arith.constant 0 : i32
    return %arg0, %c0_i32, %c0_i32_0 : i32, i32, i32
  }
}

</mosaic_0001>

<bundles_post_ra>
// kernel: tpu_custom_call.1
= control target key start
LH: loop header
LB: loop body
LE: loop exit
PB: predicated region body
PF: predicated region fallthrough
CT: control target
= control target key end

     0   :  { %9 = vsyncpa [#allocation3], 0  ;;  %s273_s0 = inlined_call_operand.hbm [shape: f32[16,128], index: 0, kind: input, shape index: {}]   ;;  %s274_s1 = inlined_call_operand.hbm [shape: f32[16,128], index: 1, kind: input, shape index: {}]   ;;  %s275_s2 = inlined_call_operand.hbm [shape: f32[1,8,128], index: 2, kind: output, shape index: {0}]   ;;  %s276_s3 = inlined_call_operand.hbm [shape: f32[1,8,128], index: 3, kind: output, shape index: {1}]  }
   0x1   :  { %10 = vsyncpa [#allocation6], 0 }
   0x2   :  { %11 = vsyncpa [#allocation4], 0 }
   0x3   :  { %12 = vsyncpa [#allocation9], 0  ;;  %s198_s12 = smov [#allocation2]   ;;  %s102_s16 = scalar_lea.hbm %s273_s0, 256 }
   0x4   :  { %s18_s13 = sshll.u32 %s198_s12, 4  ;;  %p103_p0 = scmp.ne.s32.totalorder %s273_s0, %s102_s16  ;;  %s19_s13 = int_to_ptr.vmem [resolvable:$true] %s18_s13 }
   0x5   :  { %p106_p1 = scmp.lt.u32.totalorder %s102_s16, %s273_s0 }
   0x7   :  { %p108_p2 = pnand %p106_p1, %p103_p0 }
   0x9   :  { %111 = shalt.err (!%p108_p2)
}
   0xa   :  { %s112_s21 = scalar_lea.vmem %s19_s13, 256  ;;  %p117_p4 = scmp.lt.s32.totalorder %s19_s13, %s19_s13 }
   0xb   :  { %p113_p3 = scmp.ne.s32.totalorder %s19_s13, %s112_s21  ;;  %p118_p5 = scmp.lt.s32.totalorder %s112_s21, %s112_s21 }
   0xd   :  { %p119_p6 = por %p118_p5, %p117_p4 }
   0xf   :  { %p120_p7 = pnand %p119_p6, %p113_p3 }
  0x11   :  { %123 = shalt.err (!%p120_p7)
}
  0x12   :  { %s199_s22 = smov 128   ;;  %s200_s23 = smov 8  }
  0x13   :  { %24 = dma.hbm_to_vmem [thread:$0]  %s273_s0, 256, %s19_s13, [#allocation3], %s199_s22, %s199_s22, %s200_s23  }
  0x14   :  { %s201_s26 = smov [#allocation5]   ;;  %s124_s30 = scalar_lea.hbm %s274_s1, 256 }
  0x15   :  { %s30_s27 = sshll.u32 %s201_s26, 4  ;;  %p125_p8 = scmp.ne.s32.totalorder %s274_s1, %s124_s30  ;;  %s31_s27 = int_to_ptr.vmem [resolvable:$true] %s30_s27 }
  0x16   :  { %p128_p9 = scmp.lt.u32.totalorder %s124_s30, %s274_s1 }
  0x18   :  { %p130_p10 = pnand %p128_p9, %p125_p8 }
  0x1a   :  { %133 = shalt.err (!%p130_p10)
}
  0x1b   :  { %s134_s8 = scalar_lea.vmem %s31_s27, 256  ;;  %p139_p12 = scmp.lt.s32.totalorder %s31_s27, %s31_s27 }
  0x1c   :  { %p135_p11 = scmp.ne.s32.totalorder %s31_s27, %s134_s8  ;;  %p140_p13 = scmp.lt.s32.totalorder %s134_s8, %s134_s8 }
  0x1e   :  { %p141_p0 = por %p140_p13, %p139_p12 }
  0x20   :  { %p142_p1 = pnand %p141_p0, %p135_p11 }
  0x22   :  { %145 = shalt.err (!%p142_p1)
}
  0x23   :  { %36 = dma.hbm_to_vmem [thread:$0]  %s274_s1, 256, %s31_s27, [#allocation6], %s199_s22, %s199_s22, %s200_s23  }
  0x24   :  { %190 = dma.done.wait [#allocation3], 256  }
  0x25   :  { %191 = vsyncadd [#allocation3], 4294967040 }
  0x26   :  { %192 = dma.done.wait [#allocation6], 256  }
  0x27   :  { %193 = vsyncadd [#allocation6], 4294967040  ;;  %v43_v0 = vld [vmem:[#allocation2] sm:$0xff]  ;;  %v44_v1 = vld [vmem:[#allocation2 + $0x8] sm:$0xff]  ;;  %s202_s10 = smov [#allocation8]   ;;  %v203_v6 = vmov 0.0  }
  0x28   :  { %v45_v2 = vld [vmem:[#allocation5] sm:$0xff]  ;;  %v46_v3 = vld [vmem:[#allocation5 + $0x8] sm:$0xff]  ;;  %s79_s11 = sshll.u32 %s202_s10, 4  ;;  %s204_s12 = smov [#allocation7]   ;;  %s80_s11 = int_to_ptr.vmem [resolvable:$true] %s79_s11 }
  0x29   :  { %vm47_vm0 = vcmp.ne.f32.partialorder %v45_v2, -1.0  ;;  %v49_v4 = vsub.f32 %v43_v0, %v45_v2  ;;  %vm48_vm1 = vcmp.ne.f32.partialorder %v46_v3, -1.0  ;;  %v50_v5 = vsub.f32 %v44_v1, %v46_v3  ;;  %s69_s1 = sshll.u32 %s204_s12, 4  ;;  %s146_s13 = scalar_lea.vmem %s80_s11, 128  ;;  %s70_s1 = int_to_ptr.vmem [resolvable:$true] %s69_s1 }
  0x2a   :  { %v93_v7 = vsel %vm47_vm0, 1.0, %v203_v6  ;;  %v94_v9 = vsel %vm48_vm1, 1.0, %v203_v6  ;;  %p147_p2 = scmp.ne.s32.totalorder %s80_s11, %s146_s13  ;;  %p151_p3 = scmp.lt.s32.totalorder %s80_s11, %s80_s11 }
  0x2b   :  { %v51_v8 = vand.u32 2147483647, %v49_v4  ;;  %v52_v10 = vand.u32 2147483647, %v50_v5  ;;  %v61_v11 = vadd.f32 %v94_v9, %v93_v7  ;;  %p152_p4 = scmp.lt.s32.totalorder %s146_s13, %s146_s13 }
  0x2d   :  { %v53_v12 = vsel %vm47_vm0, %v51_v8, 0.0  ;;  %v54_v13 = vsel %vm48_vm1, %v52_v10, 0.0  ;;  %62 = vst [vmem:[#allocation8] sm:$0xff] %v61_v11  ;;  %p153_p5 = por %p152_p4, %p151_p3 }
  0x2e   :  { %v59_v14 = vadd.f32 %v54_v13, %v53_v12 }
  0x2f   :  { %p154_p6 = pnand %p153_p5, %p147_p2 }
  0x31   :  { %157 = shalt.err (!%p154_p6)
}
  0x32   :  { %s158_s16 = scalar_lea.hbm %s276_s3, 128 }
  0x33   :  { %p159_p7 = scmp.ne.s32.totalorder %s276_s3, %s158_s16  ;;  %p162_p8 = scmp.lt.u32.totalorder %s158_s16, %s276_s3 }
  0x35   :  { %p164_p9 = pnand %p162_p8, %p159_p7 }
  0x37   :  { %167 = shalt.err (!%p164_p9)
}
  0x38   :  { %82 = dma.vmem_to_hbm [thread:$0]  %s80_s11, 128, %s276_s3, [#allocation9]   ;;  %60 = vst [vmem:[#allocation7] sm:$0xff] %v59_v14 }
  0x39   :  { %s168_s23 = scalar_lea.vmem %s70_s1, 128  ;;  %p173_p11 = scmp.lt.s32.totalorder %s70_s1, %s70_s1 }
  0x3a   :  { %p169_p10 = scmp.ne.s32.totalorder %s70_s1, %s168_s23  ;;  %p174_p12 = scmp.lt.s32.totalorder %s168_s23, %s168_s23 }
  0x3c   :  { %p175_p13 = por %p174_p12, %p173_p11 }
  0x3e   :  { %p176_p0 = pnand %p175_p13, %p169_p10 }
  0x40   :  { %179 = shalt.err (!%p176_p0)
}
  0x41   :  { %s180_s26 = scalar_lea.hbm %s275_s2, 128 }
  0x42   :  { %p181_p1 = scmp.ne.s32.totalorder %s275_s2, %s180_s26  ;;  %p184_p2 = scmp.lt.u32.totalorder %s180_s26, %s275_s2 }
  0x44   :  { %p186_p3 = pnand %p184_p2, %p181_p1 }
  0x46   :  { %189 = shalt.err (!%p186_p3)
}
  0x47   :  { %72 = dma.vmem_to_hbm [thread:$0]  %s70_s1, 128, %s275_s2, [#allocation4]  }
  0x48   :  { %194 = dma.done.wait [#allocation4], 128  }
  0x49   :  { %195 = vsyncadd [#allocation4], 4294967168 }
  0x4a   :  { %196 = dma.done.wait [#allocation9], 128  }
  0x4b   :  { %197 = vsyncadd [#allocation9], 4294967168 }
  0x4c   :  { %89 = vsyncpa [#allocation3], 1 }
  0x4d   :  { %90 = vsyncpa [#allocation6], 1 }
  0x4e   :  { %91 = vsyncpa [#allocation4], 1 }
  0x4f   :  { %92 = vsyncpa [#allocation9], 1 }

</bundles_post_ra>
